<compile_context>
chip_gen: v7x
topology: tpu7x:2x2x1
jax: 0.10.0
libtpu: 0.0.40
codegen_flags: <defaults>
</compile_context>

<pallas_src>
import jax
import jax.numpy as jnp
from jax import lax
from jax.experimental import pallas as pl
from jax.experimental.pallas import tpu as pltpu

F_IN = 2    # Linear in_features
F_OUT = 3   # Linear out_features
SEQ = 3     # middle dim of x1 / minor dim of the permuted output


def _model_kernel(x_ref, wb_ref, o_ref):
    # x_ref : (SEQ*TB, F_IN)  rows ordered (b, s), seq pre-permuted to [1, 0, 2]
    # wb_ref: (F_OUT, F_IN+1) packed [W | bias]
    # o_ref : (F_OUT, SEQ*TB) == permuted output with last two dims flattened
    w = wb_ref[:, 0:F_IN]                 # (3, 2)
    b = wb_ref[:, F_IN:F_IN + 1]          # (3, 1)

    # One merged contraction for both Linear applications; the result lands
    # directly in the permuted (out_features, batch*seq) orientation.
    y = lax.dot_general(w, x_ref[...], (((1,), (1,)), ((), ())),
                        preferred_element_type=jnp.float32) + b   # (3, SEQ*TB)

    # out[:, :, 1] == 1  ->  every column j with (j % SEQ) == 1.
    col = lax.broadcasted_iota(jnp.int32, y.shape, dimension=1)
    y = jnp.where(col % SEQ == 1, jnp.float32(1.0), y)

    o_ref[...] = y.astype(o_ref.dtype)    # single full, lane-dense store


@jax.jit
def model_forward(x1, weight, bias):
    """x1: (B, 3, 2); weight: (3, 2); bias: (3,). Returns (3, B, 3)."""
    B = x1.shape[0]
    dtype = x1.dtype

    # Pack W and bias into one (3, 3) parameter slab: one DMA instead of two.
    wb = jnp.concatenate([weight, bias[:, None]], axis=1).astype(dtype)

    # Reorder the seq axis so kernel-input row (b, s) already matches output
    # position (b, s): s=0 <- x1[:, 1], s=1 <- don't-care (overwritten with 1),
    # s=2 <- x1[:, 2].  The (B, 3, 2) -> (3B, 2) flatten is a free reshape.
    xsel = jnp.take(x1, jnp.array([1, 0, 2]), axis=1).reshape(SEQ * B, F_IN)

    tb = min(B, 512)                      # batch tile (full batch at B=3)
    grid = (pl.cdiv(B, tb),)

    out2d = pl.pallas_call(
        _model_kernel,
        out_shape=jax.ShapeDtypeStruct((F_OUT, SEQ * B), dtype),
        grid=grid,
        in_specs=[
            pl.BlockSpec((SEQ * tb, F_IN), lambda i: (i, 0)),
            pl.BlockSpec((F_OUT, F_IN + 1), lambda i: (0, 0)),
        ],
        out_specs=pl.BlockSpec((F_OUT, SEQ * tb), lambda i: (0, i)),
        compiler_params=pltpu.CompilerParams(
            dimension_semantics=("parallel",)),
    )(xsel, wb)

    # (3, 3B) -> (3, B, 3): free row-major reshape == the fused permute(2,0,1).
    return out2d.reshape(F_OUT, B, SEQ)


def _reference(x1, weight, bias):
    y1 = x1[:, 1, :] @ weight.T + bias                      # (B, 3)
    y2 = x1[:, 2, :] @ weight.T + bias                      # (B, 3)
    out = jnp.stack([y1, jnp.ones_like(y1), y2], axis=1)    # (B, 3, 3)
    return jnp.transpose(out, (2, 0, 1))                    # (3, B, 3)


if __name__ == "__main__":
    key = jax.random.PRNGKey(0)
    kx, kw, kb = jax.random.split(key, 3)

    B = 3
    x1 = jax.random.normal(kx, (B, SEQ, F_IN), dtype=jnp.float32)
    # Deterministic Linear(2, 3) parameters (uniform, as in nn.Linear init).
    bound = 1.0 / jnp.sqrt(2.0)
    weight = jax.random.uniform(kw, (F_OUT, F_IN), minval=-bound, maxval=bound,
                                dtype=jnp.float32)
    bias = jax.random.uniform(kb, (F_OUT,), minval=-bound, maxval=bound,
                              dtype=jnp.float32)

    out = jax.block_until_ready(model_forward(x1, weight, bias))
    ref = _reference(x1, weight, bias)

    assert out.shape == (F_OUT, B, SEQ), out.shape
    assert jnp.allclose(out, ref, atol=1e-5, rtol=1e-5), "mismatch vs reference"
    print("KERNEL_OK")
</pallas_src>

<mosaic_0001>
module attributes {stable_mosaic.version = 11 : i64} {
  func.func @_model_kernel(%arg0: i32, %arg1: memref<9x2xf32, #tpu.memory_space<vmem>>, %arg2: memref<3x3xf32, #tpu.memory_space<vmem>>, %arg3: memref<3x9xf32, #tpu.memory_space<vmem>>) attributes {dimension_semantics = [#tpu.dimension_semantics<parallel>], iteration_bounds = array<i64: 1>, scalar_prefetch = 0 : i64, scratch_operands = 0 : i64, tpu.core_type = #tpu.core_type<tc>, window_params = [{transform_indices = @transform_0, window_bounds = array<i64: 9, 2>}, {pipeline_mode = #tpu.pipeline_mode<synchronous>, transform_indices = @transform_1, window_bounds = array<i64: 3, 3>}, {transform_indices = @transform_2, window_bounds = array<i64: 3, 9>}]} {
    %c0 = arith.constant 0 : index
    %c0_0 = arith.constant 0 : index
    %0 = vector.load %arg2[%c0, %c0_0] : memref<3x3xf32, #tpu.memory_space<vmem>>, vector<3x2xf32>
    %c0_1 = arith.constant 0 : index
    %c2 = arith.constant 2 : index
    %1 = vector.load %arg2[%c0_1, %c2] : memref<3x3xf32, #tpu.memory_space<vmem>>, vector<3x1xf32>
    %c0_2 = arith.constant 0 : index
    %c0_3 = arith.constant 0 : index
    %2 = vector.load %arg1[%c0_2, %c0_3] : memref<9x2xf32, #tpu.memory_space<vmem>>, vector<9x2xf32>
    %cst = arith.constant dense<0.000000e+00> : vector<3x9xf32>
    %3 = tpu.matmul %0, %2, %cst {dimension_numbers = #tpu.dot_dimension_numbers<[1], [1], [0], [0], [0, 0, 1, 0], [], []>} : vector<3x2xf32>, vector<9x2xf32>, vector<3x9xf32> -> vector<3x9xf32>
    %4 = vector.broadcast %1 : vector<3x1xf32> to vector<3x9xf32>
    %5 = arith.addf %3, %4 : vector<3x9xf32>
    %6 = tpu.iota {dimensions = array<i32: 1>} : vector<3x9xi32>
    %c3_i32 = arith.constant 3 : i32
    %c0_i32 = arith.constant 0 : i32
    %7 = arith.cmpi eq, %c3_i32, %c0_i32 : i32
    %c1_i32 = arith.constant 1 : i32
    %8 = arith.select %7, %c1_i32, %c3_i32 : i32
    %9 = vector.broadcast %8 : i32 to vector<3x9xi32>
    %10 = arith.remsi %6, %9 : vector<3x9xi32>
    %c0_i32_4 = arith.constant 0 : i32
    %11 = vector.broadcast %c0_i32_4 : i32 to vector<3x9xi32>
    %12 = arith.cmpi ne, %10, %11 : vector<3x9xi32>
    %c0_i32_5 = arith.constant 0 : i32
    %13 = vector.broadcast %c0_i32_5 : i32 to vector<3x9xi32>
    %14 = arith.cmpi slt, %10, %13 : vector<3x9xi32>
    %c0_i32_6 = arith.constant 0 : i32
    %15 = arith.cmpi slt, %8, %c0_i32_6 : i32
    %16 = vector.broadcast %15 : i1 to vector<3x9xi1>
    %17 = vector.broadcast %16 : vector<3x9xi1> to vector<3x9xi1>
    %18 = arith.xori %14, %17 : vector<3x9xi1>
    %19 = arith.andi %18, %12 : vector<3x9xi1>
    %20 = vector.broadcast %8 : i32 to vector<3x9xi32>
    %21 = arith.addi %10, %20 : vector<3x9xi32>
    %22 = arith.select %19, %21, %10 : vector<3x9xi1>, vector<3x9xi32>
    %c1_i32_7 = arith.constant 1 : i32
    %23 = vector.broadcast %c1_i32_7 : i32 to vector<3x9xi32>
    %24 = arith.cmpi eq, %22, %23 : vector<3x9xi32>
    %cst_8 = arith.constant 1.000000e+00 : f32
    %25 = vector.broadcast %cst_8 : f32 to vector<3x9xf32>
    %26 = arith.select %24, %25, %5 : vector<3x9xi1>, vector<3x9xf32>
    %c0_9 = arith.constant 0 : index
    %c0_10 = arith.constant 0 : index
    %27 = vector.load %arg3[%c0_9, %c0_10] : memref<3x9xf32, #tpu.memory_space<vmem>>, vector<3x9xf32>
    tpu.vector_store %arg3[%c0_9, %c0_10], %26 {strides = array<i32>} : memref<3x9xf32, #tpu.memory_space<vmem>>, vector<3x9xf32>,
    return
  }
  func.func @transform_0(%arg0: i32) -> (i32, i32) {
    %c0_i32 = arith.constant 0 : i32
    %c0_i32_0 = arith.constant 0 : i32
    return %arg0, %c0_i32 : i32, i32
  }
  func.func @transform_1(%arg0: i32) -> (i32, i32) {
    %c0_i32 = arith.constant 0 : i32
    %c0_i32_0 = arith.constant 0 : i32
    %c0_i32_1 = arith.constant 0 : i32
    return %c0_i32, %c0_i32_0 : i32, i32
  }
  func.func @transform_2(%arg0: i32) -> (i32, i32) {
    %c0_i32 = arith.constant 0 : i32
    %c0_i32_0 = arith.constant 0 : i32
    return %c0_i32, %arg0 : i32, i32
  }
}

</mosaic_0001>

<bundles_post_ra>
// kernel: model_forward.1
= control target key start
LH: loop header
LB: loop body
LE: loop exit
PB: predicated region body
PF: predicated region fallthrough
CT: control target
= control target key end

     0   :  { %vm19_vm0 = vcmask 15360   ;;  %v148_v0 = vmov 0.0|0.0   ;;  %vm149_vm2 = vmmov 0   ;;  %v150_v3 = vmov 0.0   ;;  %s186_s0 = inlined_call_operand.vmem [shape: f32[9,2], index: 0, kind: input, shape index: {}]   ;;  %s187_s1 = inlined_call_operand.vmem [shape: f32[3,3], index: 1, kind: input, shape index: {}]   ;;  %s188_s2 = inlined_call_operand.vmem [shape: f32[3,9], index: 2, kind: output, shape index: {}]  }
   0x1   :  { %137 = vmatprep.subr.bf16.mxu0 %v148_v0  ;;  %v12_v1 = vld [vmem:[%s186_s0] sm:$0xff]  ;;  %v13_v2 = vld [vmem:[%s186_s0 + $0x8] sm:$0x1]  ;;  %vm139_vm1 = vmpackc.low %vm19_vm0, %vm19_vm0  ;;  %134 = vmatprep.mubr.msk.f32.mxu0 %vm149_vm2, %v150_v3  ;;  %v151_v6 = vmov 2   ;;  %v98_v7 = vlaneseq  ;;  %vm118_vm7 = vcmask 67584  }
   0x2   :  { %v138_v4 = vpack.c.bf16 %v13_v2, %v12_v1  ;;  %v11_v5 = vld [vmem:[%s187_s1] sm:$0x7]  ;;  %147 = vset.pattern.permute.xlu0 %v151_v6 }
   0x3   :  { %16 = vperm.xlu0 %147, %v11_v5   ;;  %v99_v8 = vand.u32 127, %v98_v7 }
   0x4   :  { %140 = vmatpush3.bf16.xpose.msk.msra.mxu0 %vm139_vm1, %v138_v4 }
   0x5   :  { %v179_v9 = vmul.u32.u64.low 2863311531, %v99_v8  ;;  %v180_v10 = vmul.u32.u64.high 2863311531, %v99_v8, %v179_v9 }
   0x7   :  { %v106_v11 = vshrl.u32 %v180_v10, 1 }
   0x9   :  { %v107_v12 = vmul.u32 3, %v106_v11 }
   0xb   :  { %135 = vmatmul.mubr.msk.f32.vlgmr.msra.gmra.mrb[0].mxu0 %vm19_vm0, %v11_v5  ;;  %v108_v13 = vsub.s32 %v99_v8, %v107_v12 }
   0xd   :  { %vm111_vm3 = vcmp.ne.s32.totalorder %v108_v13, 0  ;;  %vm112_vm4 = vcmp.lt.s32.totalorder %v108_v13, 0  ;;  %v114_v14 = vadd.s32 3, %v108_v13 }
   0xe   :  { %vm113_vm5 = vmand %vm112_vm4, %vm111_vm3 }
   0xf   :  { %v115_v15 = vsel %vm113_vm5, %v114_v14, %v108_v13 }
  0x10   :  { %vm116_vm6 = vcmp.eq.s32.totalorder %v115_v15, 1 }
  0x82   :  { %v17_v16 = vpop.permute.xlu0 %16 }
  0xde   :  { %v94_v17 = vpop.f32.mrb[0].mxu0 }
  0xdf   :  { %v95_v18 = vadd.f32 %v94_v17, %v17_v16  ;;  %v136_v19 = vpop.f32.mrb[1].mxu0 }
  0xe1   :  { %v117_v20 = vsel %vm116_vm6, 1.0, %v95_v18 }
  0xe2   :  { %119 = vst.msk [vmem:[%s188_s2] sm:$0x7] %vm118_vm7, %v117_v20 }

</bundles_post_ra>
